<compile_context>
chip_gen: v7x
topology: tpu7x:2x2x1
jax: 0.10.0
libtpu: 0.0.40
codegen_flags: <defaults>
</compile_context>

<pallas_src>
import jax
import jax.numpy as jnp
from jax import lax
from jax.experimental import pallas as pl
from jax.experimental.pallas import tpu as pltpu

BN_EPS = 1e-5
SOFTPLUS_THRESHOLD = 20.0
LANES = 128


def _round_up(n, m):
    return (n + m - 1) // m * m


def _pad_block(w, rows):
    """Zero-pad a [r, c] matrix to [rows, 128]."""
    w = jnp.asarray(w, jnp.float32)
    return jnp.pad(w, ((0, rows - w.shape[0]), (0, LANES - w.shape[1])))


def pack_params(params, input_dim, output_dim):
    """Pack 7 (w [in,out], b [out]) pairs into one (8,128)-aligned f32 slab.

    Heads 6 & 7 are fused into a single [8, 2*output_dim] weight / bias.
    Returns (slab [R,128], weight_row_offsets, bias_row_offset, in_rows).
    """
    del output_dim  # implied by the head shapes
    in_rows = _round_up(input_dim, 8)
    (w1, b1), (w2, b2), (w3, b3), (w4, b4), (w5, b5), (w6, b6), (w7, b7) = params
    w67 = jnp.concatenate([jnp.asarray(w6), jnp.asarray(w7)], axis=1)
    b67 = jnp.concatenate([jnp.ravel(b6), jnp.ravel(b7)], axis=0)

    weight_blocks = [
        _pad_block(w1, in_rows),   # [in_rows, 128]
        _pad_block(w2, LANES),     # [128, 128] (valid cols 0..63)
        _pad_block(w3, LANES),     # [128, 128] (valid cols 0..31)
        _pad_block(w4, LANES),     # [128, 128] (valid cols 0..15)
        _pad_block(w5, LANES),     # [128, 128] (valid cols 0..7)
        _pad_block(w67, LANES),    # [128, 128] (valid cols 0..2*out-1)
    ]
    bias_block = jnp.zeros((8, LANES), jnp.float32)
    for i, b in enumerate([b1, b2, b3, b4, b5, b67]):
        b = jnp.ravel(jnp.asarray(b, jnp.float32))
        bias_block = bias_block.at[i, : b.shape[0]].set(b)

    row_offsets = []
    off = 0
    for blk in weight_blocks:
        row_offsets.append(off)
        off += blk.shape[0]
    bias_off = off
    slab = jnp.concatenate(weight_blocks + [bias_block], axis=0)
    return slab, tuple(row_offsets), bias_off, in_rows


def _make_net_kernel(batch, softplus_beta, row_offsets, in_rows, bias_off):
    inv_beta = 1.0 / softplus_beta
    inv_n = 1.0 / batch

    def softplus(z):
        # nn.Softplus(beta): (1/beta) * log1p(exp(beta*z)), linear above threshold
        bz = z * softplus_beta
        return jnp.where(bz > SOFTPLUS_THRESHOLD, z, jnp.log1p(jnp.exp(bz)) * inv_beta)

    def batchnorm(h):
        # Training-mode BatchNorm1d (biased variance, gamma=1, beta=0), one pass.
        # TODO(synk): running-mean/var buffer updates (training side effect) are
        # not emitted; they do not affect the forward output.
        s = jnp.sum(h, axis=0, keepdims=True)
        ss = jnp.sum(h * h, axis=0, keepdims=True)
        mean = s * inv_n
        var = ss * inv_n - mean * mean
        return (h - mean) * lax.rsqrt(var + BN_EPS)

    def kernel(x_ref, slab_ref, out_ref):
        x = x_ref[...]                                   # [B, in_rows]
        biases = slab_ref[bias_off:bias_off + 8, :]      # [8, 128]

        def layer(h, idx, rows):
            off = row_offsets[idx]
            w = slab_ref[off:off + rows, :]              # static, tile-aligned slice
            return (jnp.dot(h, w, preferred_element_type=jnp.float32)
                    + biases[idx:idx + 1, :])

        h = jnp.maximum(layer(x, 0, in_rows), 0.0)       # relu(linear1)
        h = jnp.maximum(layer(h, 1, LANES), 0.0)         # relu(linear2)
        h = jnp.maximum(layer(h, 2, LANES), 0.0)         # relu(linear3)
        h = batchnorm(h)                                 # bn1
        h = jnp.maximum(layer(h, 3, LANES), 0.0)         # relu(linear4)
        h = jnp.maximum(layer(h, 4, LANES), 0.0)         # relu(linear5)
        h = batchnorm(h)                                 # bn2
        out_ref[...] = softplus(layer(h, 5, LANES))      # fused linear6|linear7 heads

    return kernel


def net_forward(x, slab, row_offsets, bias_off, in_rows, input_dim, output_dim):
    """Run the packed-slab Pallas kernel; returns (beta, eta) each [B, output_dim]."""
    B = x.shape[0]
    x_pad = jnp.pad(x.astype(jnp.float32), ((0, 0), (0, in_rows - input_dim)))

    kernel = _make_net_kernel(B, float(output_dim), row_offsets, in_rows, bias_off)
    vmem = pl.BlockSpec(memory_space=pltpu.MemorySpace.VMEM)

    out = pl.pallas_call(
        kernel,
        out_shape=jax.ShapeDtypeStruct((B, LANES), jnp.float32),
        in_specs=[vmem, vmem],
        out_specs=vmem,
    )(x_pad, slab)

    beta = out[:, :output_dim]
    eta = out[:, output_dim:2 * output_dim]
    return beta, eta


def init_params(key, input_dim, output_dim):
    """Deterministic PyTorch-style (uniform +-1/sqrt(fan_in)) initialization."""
    dims = [(input_dim, 128), (128, 64), (64, 32), (32, 16), (16, 8),
            (8, output_dim), (8, output_dim)]
    params = []
    for (fan_in, fan_out) in dims:
        key, kw, kb = jax.random.split(key, 3)
        bound = 1.0 / (fan_in ** 0.5)
        w = jax.random.uniform(kw, (fan_in, fan_out), jnp.float32, -bound, bound)
        b = jax.random.uniform(kb, (fan_out,), jnp.float32, -bound, bound)
        params.append((w, b))
    return params


def _reference_forward(x, params, output_dim):
    """Pure-JAX reference of the PyTorch forward (training-mode BN, gamma=1)."""
    def sp(z, beta):
        bz = beta * z
        return jnp.where(bz > SOFTPLUS_THRESHOLD, z, jnp.log1p(jnp.exp(bz)) / beta)

    def bn(h):
        mean = jnp.mean(h, axis=0, keepdims=True)
        var = jnp.mean((h - mean) ** 2, axis=0, keepdims=True)
        return (h - mean) / jnp.sqrt(var + BN_EPS)

    (w1, b1), (w2, b2), (w3, b3), (w4, b4), (w5, b5), (w6, b6), (w7, b7) = params
    h = jnp.maximum(x @ w1 + b1, 0.0)
    h = jnp.maximum(h @ w2 + b2, 0.0)
    h = jnp.maximum(h @ w3 + b3, 0.0)
    h = bn(h)
    h = jnp.maximum(h @ w4 + b4, 0.0)
    h = jnp.maximum(h @ w5 + b5, 0.0)
    h = bn(h)
    beta = sp(h @ w6 + b6, float(output_dim))
    eta = sp(h @ w7 + b7, float(output_dim))
    return beta, eta


if __name__ == "__main__":
    INPUT_DIM = 16
    OUTPUT_DIM = 2
    BATCH = 8

    key = jax.random.PRNGKey(0)
    key, kx = jax.random.split(key)
    x = jax.random.normal(kx, (BATCH, INPUT_DIM), jnp.float32)
    params = init_params(key, INPUT_DIM, OUTPUT_DIM)

    slab, row_offsets, bias_off, in_rows = pack_params(params, INPUT_DIM, OUTPUT_DIM)
    beta, eta = net_forward(x, slab, row_offsets, bias_off, in_rows,
                            INPUT_DIM, OUTPUT_DIM)
    jax.block_until_ready((beta, eta))
    assert beta.shape == (BATCH, OUTPUT_DIM) and eta.shape == (BATCH, OUTPUT_DIM)

    beta_ref, eta_ref = _reference_forward(x, params, OUTPUT_DIM)
    assert jnp.allclose(beta, beta_ref, rtol=1e-3, atol=1e-3)
    assert jnp.allclose(eta, eta_ref, rtol=1e-3, atol=1e-3)

    print("KERNEL_OK")
</pallas_src>

<mosaic_0001>
module attributes {stable_mosaic.version = 11 : i64} {
  func.func @kernel(%arg0: memref<8x16xf32, #tpu.memory_space<vmem>>, %arg1: memref<664x128xf32, #tpu.memory_space<vmem>>, %arg2: memref<8x128xf32, #tpu.memory_space<vmem>>) attributes {dimension_semantics = [], scalar_prefetch = 0 : i64, scratch_operands = 0 : i64, tpu.core_type = #tpu.core_type<tc>} {
    %c0 = arith.constant 0 : index
    %c0_0 = arith.constant 0 : index
    %0 = vector.load %arg0[%c0, %c0_0] : memref<8x16xf32, #tpu.memory_space<vmem>>, vector<8x16xf32>
    %c656 = arith.constant 656 : index
    %c0_1 = arith.constant 0 : index
    %1 = vector.load %arg1[%c656, %c0_1] : memref<664x128xf32, #tpu.memory_space<vmem>>, vector<8x128xf32>
    %c0_2 = arith.constant 0 : index
    %c0_3 = arith.constant 0 : index
    %2 = vector.load %arg1[%c0_2, %c0_3] : memref<664x128xf32, #tpu.memory_space<vmem>>, vector<16x128xf32>
    %cst = arith.constant dense<0.000000e+00> : vector<8x128xf32>
    %3 = tpu.matmul %0, %2, %cst {dimension_numbers = #tpu.dot_dimension_numbers<[1], [0], [0], [1], [0, 0, 1, 1], [], []>} : vector<8x16xf32>, vector<16x128xf32>, vector<8x128xf32> -> vector<8x128xf32>
    %4 = vector.extract_strided_slice %1 {offsets = [0, 0], sizes = [1, 128], strides = [1, 1]} : vector<8x128xf32> to vector<1x128xf32>
    %5 = vector.broadcast %4 : vector<1x128xf32> to vector<8x128xf32>
    %6 = arith.addf %3, %5 : vector<8x128xf32>
    %cst_4 = arith.constant 0.000000e+00 : f32
    %7 = vector.broadcast %cst_4 : f32 to vector<8x128xf32>
    %8 = arith.maximumf %6, %7 : vector<8x128xf32>
    %c16 = arith.constant 16 : index
    %c0_5 = arith.constant 0 : index
    %9 = vector.load %arg1[%c16, %c0_5] : memref<664x128xf32, #tpu.memory_space<vmem>>, vector<128x128xf32>
    %cst_6 = arith.constant dense<0.000000e+00> : vector<8x128xf32>
    %10 = tpu.matmul %8, %9, %cst_6 {dimension_numbers = #tpu.dot_dimension_numbers<[1], [0], [0], [1], [0, 0, 1, 1], [], []>} : vector<8x128xf32>, vector<128x128xf32>, vector<8x128xf32> -> vector<8x128xf32>
    %11 = vector.extract_strided_slice %1 {offsets = [1, 0], sizes = [1, 128], strides = [1, 1]} : vector<8x128xf32> to vector<1x128xf32>
    %12 = vector.broadcast %11 : vector<1x128xf32> to vector<8x128xf32>
    %13 = arith.addf %10, %12 : vector<8x128xf32>
    %cst_7 = arith.constant 0.000000e+00 : f32
    %14 = vector.broadcast %cst_7 : f32 to vector<8x128xf32>
    %15 = arith.maximumf %13, %14 : vector<8x128xf32>
    %c144 = arith.constant 144 : index
    %c0_8 = arith.constant 0 : index
    %16 = vector.load %arg1[%c144, %c0_8] : memref<664x128xf32, #tpu.memory_space<vmem>>, vector<128x128xf32>
    %cst_9 = arith.constant dense<0.000000e+00> : vector<8x128xf32>
    %17 = tpu.matmul %15, %16, %cst_9 {dimension_numbers = #tpu.dot_dimension_numbers<[1], [0], [0], [1], [0, 0, 1, 1], [], []>} : vector<8x128xf32>, vector<128x128xf32>, vector<8x128xf32> -> vector<8x128xf32>
    %18 = vector.extract_strided_slice %1 {offsets = [2, 0], sizes = [1, 128], strides = [1, 1]} : vector<8x128xf32> to vector<1x128xf32>
    %19 = vector.broadcast %18 : vector<1x128xf32> to vector<8x128xf32>
    %20 = arith.addf %17, %19 : vector<8x128xf32>
    %cst_10 = arith.constant 0.000000e+00 : f32
    %21 = vector.broadcast %cst_10 : f32 to vector<8x128xf32>
    %22 = arith.maximumf %20, %21 : vector<8x128xf32>
    %cst_11 = arith.constant dense<0.000000e+00> : vector<128xf32>
    %23 = vector.multi_reduction <add>, %22, %cst_11 [0] : vector<8x128xf32> to vector<128xf32>
    %24 = vector.shape_cast %23 : vector<128xf32> to vector<1x128xf32>
    %25 = arith.mulf %22, %22 : vector<8x128xf32>
    %cst_12 = arith.constant dense<0.000000e+00> : vector<128xf32>
    %26 = vector.multi_reduction <add>, %25, %cst_12 [0] : vector<8x128xf32> to vector<128xf32>
    %27 = vector.shape_cast %26 : vector<128xf32> to vector<1x128xf32>
    %cst_13 = arith.constant 1.250000e-01 : f32
    %28 = vector.broadcast %cst_13 : f32 to vector<1x128xf32>
    %29 = arith.mulf %24, %28 : vector<1x128xf32>
    %cst_14 = arith.constant 1.250000e-01 : f32
    %30 = vector.broadcast %cst_14 : f32 to vector<1x128xf32>
    %31 = arith.mulf %27, %30 : vector<1x128xf32>
    %32 = arith.mulf %29, %29 : vector<1x128xf32>
    %33 = arith.subf %31, %32 : vector<1x128xf32>
    %34 = vector.broadcast %29 : vector<1x128xf32> to vector<8x128xf32>
    %35 = arith.subf %22, %34 : vector<8x128xf32>
    %cst_15 = arith.constant 9.99999974E-6 : f32
    %36 = vector.broadcast %cst_15 : f32 to vector<1x128xf32>
    %37 = arith.addf %33, %36 : vector<1x128xf32>
    %38 = math.rsqrt %37 : vector<1x128xf32>
    %39 = vector.broadcast %38 : vector<1x128xf32> to vector<8x128xf32>
    %40 = arith.mulf %35, %39 : vector<8x128xf32>
    %c272 = arith.constant 272 : index
    %c0_16 = arith.constant 0 : index
    %41 = vector.load %arg1[%c272, %c0_16] : memref<664x128xf32, #tpu.memory_space<vmem>>, vector<128x128xf32>
    %cst_17 = arith.constant dense<0.000000e+00> : vector<8x128xf32>
    %42 = tpu.matmul %40, %41, %cst_17 {dimension_numbers = #tpu.dot_dimension_numbers<[1], [0], [0], [1], [0, 0, 1, 1], [], []>} : vector<8x128xf32>, vector<128x128xf32>, vector<8x128xf32> -> vector<8x128xf32>
    %43 = vector.extract_strided_slice %1 {offsets = [3, 0], sizes = [1, 128], strides = [1, 1]} : vector<8x128xf32> to vector<1x128xf32>
    %44 = vector.broadcast %43 : vector<1x128xf32> to vector<8x128xf32>
    %45 = arith.addf %42, %44 : vector<8x128xf32>
    %cst_18 = arith.constant 0.000000e+00 : f32
    %46 = vector.broadcast %cst_18 : f32 to vector<8x128xf32>
    %47 = arith.maximumf %45, %46 : vector<8x128xf32>
    %c400 = arith.constant 400 : index
    %c0_19 = arith.constant 0 : index
    %48 = vector.load %arg1[%c400, %c0_19] : memref<664x128xf32, #tpu.memory_space<vmem>>, vector<128x128xf32>
    %cst_20 = arith.constant dense<0.000000e+00> : vector<8x128xf32>
    %49 = tpu.matmul %47, %48, %cst_20 {dimension_numbers = #tpu.dot_dimension_numbers<[1], [0], [0], [1], [0, 0, 1, 1], [], []>} : vector<8x128xf32>, vector<128x128xf32>, vector<8x128xf32> -> vector<8x128xf32>
    %50 = vector.extract_strided_slice %1 {offsets = [4, 0], sizes = [1, 128], strides = [1, 1]} : vector<8x128xf32> to vector<1x128xf32>
    %51 = vector.broadcast %50 : vector<1x128xf32> to vector<8x128xf32>
    %52 = arith.addf %49, %51 : vector<8x128xf32>
    %cst_21 = arith.constant 0.000000e+00 : f32
    %53 = vector.broadcast %cst_21 : f32 to vector<8x128xf32>
    %54 = arith.maximumf %52, %53 : vector<8x128xf32>
    %cst_22 = arith.constant dense<0.000000e+00> : vector<128xf32>
    %55 = vector.multi_reduction <add>, %54, %cst_22 [0] : vector<8x128xf32> to vector<128xf32>
    %56 = vector.shape_cast %55 : vector<128xf32> to vector<1x128xf32>
    %57 = arith.mulf %54, %54 : vector<8x128xf32>
    %cst_23 = arith.constant dense<0.000000e+00> : vector<128xf32>
    %58 = vector.multi_reduction <add>, %57, %cst_23 [0] : vector<8x128xf32> to vector<128xf32>
    %59 = vector.shape_cast %58 : vector<128xf32> to vector<1x128xf32>
    %cst_24 = arith.constant 1.250000e-01 : f32
    %60 = vector.broadcast %cst_24 : f32 to vector<1x128xf32>
    %61 = arith.mulf %56, %60 : vector<1x128xf32>
    %cst_25 = arith.constant 1.250000e-01 : f32
    %62 = vector.broadcast %cst_25 : f32 to vector<1x128xf32>
    %63 = arith.mulf %59, %62 : vector<1x128xf32>
    %64 = arith.mulf %61, %61 : vector<1x128xf32>
    %65 = arith.subf %63, %64 : vector<1x128xf32>
    %66 = vector.broadcast %61 : vector<1x128xf32> to vector<8x128xf32>
    %67 = arith.subf %54, %66 : vector<8x128xf32>
    %cst_26 = arith.constant 9.99999974E-6 : f32
    %68 = vector.broadcast %cst_26 : f32 to vector<1x128xf32>
    %69 = arith.addf %65, %68 : vector<1x128xf32>
    %70 = math.rsqrt %69 : vector<1x128xf32>
    %71 = vector.broadcast %70 : vector<1x128xf32> to vector<8x128xf32>
    %72 = arith.mulf %67, %71 : vector<8x128xf32>
    %c528 = arith.constant 528 : index
    %c0_27 = arith.constant 0 : index
    %73 = vector.load %arg1[%c528, %c0_27] : memref<664x128xf32, #tpu.memory_space<vmem>>, vector<128x128xf32>
    %cst_28 = arith.constant dense<0.000000e+00> : vector<8x128xf32>
    %74 = tpu.matmul %72, %73, %cst_28 {dimension_numbers = #tpu.dot_dimension_numbers<[1], [0], [0], [1], [0, 0, 1, 1], [], []>} : vector<8x128xf32>, vector<128x128xf32>, vector<8x128xf32> -> vector<8x128xf32>
    %75 = vector.extract_strided_slice %1 {offsets = [5, 0], sizes = [1, 128], strides = [1, 1]} : vector<8x128xf32> to vector<1x128xf32>
    %76 = vector.broadcast %75 : vector<1x128xf32> to vector<8x128xf32>
    %77 = arith.addf %74, %76 : vector<8x128xf32>
    %cst_29 = arith.constant 2.000000e+00 : f32
    %78 = vector.broadcast %cst_29 : f32 to vector<8x128xf32>
    %79 = arith.mulf %77, %78 : vector<8x128xf32>
    %cst_30 = arith.constant 2.000000e+01 : f32
    %80 = vector.broadcast %cst_30 : f32 to vector<8x128xf32>
    %81 = arith.cmpf ogt, %79, %80 : vector<8x128xf32>
    %82 = math.exp %79 : vector<8x128xf32>
    %83 = math.log1p %82 : vector<8x128xf32>
    %cst_31 = arith.constant 5.000000e-01 : f32
    %84 = vector.broadcast %cst_31 : f32 to vector<8x128xf32>
    %85 = arith.mulf %83, %84 : vector<8x128xf32>
    %86 = arith.select %81, %77, %85 : vector<8x128xi1>, vector<8x128xf32>
    %c0_32 = arith.constant 0 : index
    %c0_33 = arith.constant 0 : index
    %87 = vector.load %arg2[%c0_32, %c0_33] : memref<8x128xf32, #tpu.memory_space<vmem>>, vector<8x128xf32>
    tpu.vector_store %arg2[%c0_32, %c0_33], %86 {strides = array<i32>} : memref<8x128xf32, #tpu.memory_space<vmem>>, vector<8x128xf32>,
    return
  }
}

</mosaic_0001>

<bundles_post_ra>
// kernel: tpu_custom_call.1
= control target key start
LH: loop header
LB: loop body
LE: loop exit
PB: predicated region body
PF: predicated region fallthrough
CT: control target
= control target key end

     0   :  { %7 = vsyncpa [#allocation3], 0  ;;  %s1266_s0 = inlined_call_operand.hbm [shape: f32[8,16], index: 0, kind: input, shape index: {}]   ;;  %s1267_s1 = inlined_call_operand.hbm [shape: f32[664,128], index: 1, kind: input, shape index: {}]   ;;  %s1268_s2 = inlined_call_operand.hbm [shape: f32[8,128], index: 2, kind: output, shape index: {}]  }
   0x1   :  { %8 = vsyncpa [#allocation6], 0 }
   0x2   :  { %9 = vsyncpa [#allocation4], 0  ;;  %s1131_s9 = smov [#allocation2]   ;;  %s1132_s11 = smov [#allocation5]  }
   0x3   :  { %s16_s10 = sshll.u32 %s1131_s9, 4  ;;  %s25_s12 = sshll.u32 %s1132_s11, 4  ;;  %s17_s10 = int_to_ptr.vmem [resolvable:$true] %s16_s10  ;;  %s1154_s12 = int_to_ptr.vmem [resolvable:$true] %s25_s12 }
   0x4   :  { %s1059_s15 = scalar_lea.hbm %s1266_s0, 128 }
   0x5   :  { %p1060_p0 = scmp.ne.s32.totalorder %s1266_s0, %s1059_s15  ;;  %p1063_p1 = scmp.lt.u32.totalorder %s1059_s15, %s1266_s0 }
   0x7   :  { %p1065_p2 = pnand %p1063_p1, %p1060_p0 }
   0x9   :  { %1068 = shalt.err (!%p1065_p2)
}
   0xa   :  { %s1069_s20 = scalar_lea.vmem %s17_s10, 128  ;;  %p1074_p4 = scmp.lt.s32.totalorder %s17_s10, %s17_s10 }
   0xb   :  { %p1070_p3 = scmp.ne.s32.totalorder %s17_s10, %s1069_s20  ;;  %p1075_p5 = scmp.lt.s32.totalorder %s1069_s20, %s1069_s20 }
   0xd   :  { %p1076_p6 = por %p1075_p5, %p1074_p4 }
   0xf   :  { %p1077_p7 = pnand %p1076_p6, %p1070_p3 }
  0x11   :  { %1080 = shalt.err (!%p1077_p7)
}
  0x12   :  { %19 = dma.hbm_to_vmem [thread:$0]  %s1266_s0, 128, %s17_s10, [#allocation3]  }
  0x13   :  { %s1081_s25 = scalar_lea.hbm %s1267_s1, 10624 }
  0x14   :  { %p1082_p8 = scmp.ne.s32.totalorder %s1267_s1, %s1081_s25  ;;  %p1085_p9 = scmp.lt.u32.totalorder %s1081_s25, %s1267_s1 }
  0x16   :  { %p1087_p10 = pnand %p1085_p9, %p1082_p8 }
  0x18   :  { %1090 = shalt.err (!%p1087_p10)
}
  0x19   :  { %s1091_s30 = scalar_lea.vmem %s1154_s12, 10624  ;;  %p1096_p12 = scmp.lt.s32.totalorder %s1154_s12, %s1154_s12 }
  0x1a   :  { %p1092_p11 = scmp.ne.s32.totalorder %s1154_s12, %s1091_s30  ;;  %p1097_p13 = scmp.lt.s32.totalorder %s1091_s30, %s1091_s30 }
  0x1c   :  { %p1098_p0 = por %p1097_p13, %p1096_p12 }
  0x1e   :  { %p1099_p1 = pnand %p1098_p0, %p1092_p11 }
  0x20   :  { %1102 = shalt.err (!%p1099_p1)
}
  0x21   :  { %s1133_s0 = smov 128   ;;  %s1134_s3 = smov 8  }
  0x22   :  { %31 = dma.hbm_to_vmem [thread:$0]  %s1267_s1, 10624, %s1154_s12, [#allocation6], %s1133_s0, %s1133_s0, %s1134_s3  }
  0x23   :  { %1125 = dma.done.wait [#allocation3], 128  }
  0x24   :  { %1126 = vsyncadd [#allocation3], 4294967168 }
  0x25   :  { %1127 = dma.done.wait [#allocation6], 10624  }
  0x26   :  { %1128 = vsyncadd [#allocation6], 4294956672  ;;  %v1135_v0 = vmov 0.0|0.0   ;;  %vm1136_vm0 = vmmov 0   ;;  %v1137_v1 = vmov 0.0   ;;  %v40_v2 = vld [vmem:[#allocation5] sm:$0xff]  ;;  %v42_v51 = vlaneseq }
  0x27   :  { %920 = vmatprep.subr.bf16.mxu0 %v1135_v0  ;;  %742 = vmatprep.mubr.msk.f32.mxu0 %vm1136_vm0, %v1137_v1  ;;  %v41_v3 = vld [vmem:[#allocation5 + $0x8] sm:$0xff]  ;;  %v121_v5 = vld [vmem:[#allocation5 + $0x10] sm:$0xff]  ;;  %v122_v6 = vld [vmem:[#allocation5 + $0x18] sm:$0xff]  ;;  %vm46_vm1 = vcmask 130048   ;;  %s1138_s1 = smov [#allocation7]  }
  0x28   :  { %923 = vmatprep.subr.bf16.mxu1 %v1135_v0  ;;  %777 = vmatprep.mubr.msk.f32.mxu1 %vm1136_vm0, %v1137_v1  ;;  %v921_v4 = vpack.c.bf16 %v41_v3, %v40_v2  ;;  %v123_v7 = vld [vmem:[#allocation5 + $0x20] sm:$0xff]  ;;  %v924_v8 = vpack.c.bf16 %v122_v6, %v121_v5  ;;  %v124_v9 = vld [vmem:[#allocation5 + $0x28] sm:$0xff]  ;;  %v38_v10 = vld [vmem:[#allocation2] sm:$0xff]  ;;  %v1209_v52 = vshrl.u32 %v42_v51, 7  ;;  %s639_s6 = sshll.u32 %s1138_s1, 4  ;;  %s640_s6 = int_to_ptr.vmem [resolvable:$true] %s639_s6 }
  0x29   :  { %v927_v11 = vpack.c.bf16 %v124_v9, %v123_v7  ;;  %v125_v12 = vld [vmem:[#allocation5 + $0x30] sm:$0xff]  ;;  %v126_v13 = vld [vmem:[#allocation5 + $0x38] sm:$0xff]  ;;  %v127_v15 = vld [vmem:[#allocation5 + $0x40] sm:$0xff]  ;;  %s1103_s7 = scalar_lea.vmem %s640_s6, 128  ;;  %p1108_p3 = scmp.lt.s32.totalorder %s640_s6, %s640_s6 }
  0x2a   :  { %922 = vmatpush3.bf16.msra.mxu0 %v921_v4  ;;  %925 = vmatpush3.bf16.msra.mxu1 %v924_v8  ;;  %v930_v14 = vpack.c.bf16 %v126_v13, %v125_v12  ;;  %v128_v16 = vld [vmem:[#allocation5 + $0x48] sm:$0xff]  ;;  %v129_v18 = vld [vmem:[#allocation5 + $0x50] sm:$0xff]  ;;  %v130_v19 = vld [vmem:[#allocation5 + $0x58] sm:$0xff]  ;;  %v44_v53 = vsub.s32 0, %v1209_v52  ;;  %v139_v63 = vsub.s32 1, %v1209_v52  ;;  %p1104_p2 = scmp.ne.s32.totalorder %s640_s6, %s1103_s7  ;;  %p1109_p4 = scmp.lt.s32.totalorder %s1103_s7, %s1103_s7 }
  0x2b   :  { %947 = vmatprep.subr.bf16.mxu0 %v1135_v0  ;;  %926 = vmatprep.subr.bf16.mxu1 %v1135_v0  ;;  %v933_v17 = vpack.c.bf16 %v128_v16, %v127_v15  ;;  %v936_v20 = vpack.c.bf16 %v130_v19, %v129_v18  ;;  %v131_v21 = vld [vmem:[#allocation5 + $0x60] sm:$0xff]  ;;  %v132_v22 = vld [vmem:[#allocation5 + $0x68] sm:$0xff]  ;;  %v133_v24 = vld [vmem:[#allocation5 + $0x70] sm:$0xff] }
  0x2c   :  { %v939_v23 = vpack.c.bf16 %v132_v22, %v131_v21  ;;  %v134_v25 = vld [vmem:[#allocation5 + $0x78] sm:$0xff]  ;;  %v135_v27 = vld [vmem:[#allocation5 + $0x80] sm:$0xff]  ;;  %v136_v28 = vld [vmem:[#allocation5 + $0x88] sm:$0xff]  ;;  %p1110_p5 = por %p1109_p4, %p1108_p3 }
  0x2d   :  { %743 = vmatmul.mubr.msk.f32.vlgmr.msra.gmra.mrb[0].mxu0 %vm46_vm1, %v38_v10  ;;  %v942_v26 = vpack.c.bf16 %v134_v25, %v133_v24  ;;  %v945_v29 = vpack.c.bf16 %v136_v28, %v135_v27  ;;  %v212_v30 = vld [vmem:[#allocation5 + $0x90] sm:$0xff]  ;;  %v213_v31 = vld [vmem:[#allocation5 + $0x98] sm:$0xff]  ;;  %v214_v32 = vld [vmem:[#allocation5 + $0xa0] sm:$0xff] }
  0x2e   :  { %812 = vmatprep.mubr.msk.f32.mxu0 %vm1136_vm0, %v1137_v1  ;;  %928 = vmatpush3.bf16.msra.mxu1 %v927_v11  ;;  %v948_v33 = vpack.c.bf16 %v213_v31, %v212_v30  ;;  %v215_v34 = vld [vmem:[#allocation5 + $0xa8] sm:$0xff]  ;;  %v216_v36 = vld [vmem:[#allocation5 + $0xb0] sm:$0xff]  ;;  %v217_v37 = vld [vmem:[#allocation5 + $0xb8] sm:$0xff]  ;;  %p1111_p6 = pnand %p1110_p5, %p1104_p2 }
  0x2f   :  { %929 = vmatprep.subr.bf16.mxu1 %v1135_v0  ;;  %v951_v35 = vpack.c.bf16 %v215_v34, %v214_v32  ;;  %v954_v38 = vpack.c.bf16 %v217_v37, %v216_v36  ;;  %v218_v39 = vld [vmem:[#allocation5 + $0xc0] sm:$0xff]  ;;  %v219_v40 = vld [vmem:[#allocation5 + $0xc8] sm:$0xff]  ;;  %v220_v42 = vld [vmem:[#allocation5 + $0xd0] sm:$0xff] }
  0x30   :  { %949 = vmatpush3.bf16.msra.mxu0 %v948_v33  ;;  %v957_v41 = vpack.c.bf16 %v219_v40, %v218_v39  ;;  %v221_v43 = vld [vmem:[#allocation5 + $0xd8] sm:$0xff]  ;;  %v222_v45 = vld [vmem:[#allocation5 + $0xe0] sm:$0xff]  ;;  %v223_v46 = vld [vmem:[#allocation5 + $0xe8] sm:$0xff] }
  0x31   :  { %950 = vmatprep.subr.bf16.mxu0 %v1135_v0  ;;  %v960_v44 = vpack.c.bf16 %v221_v43, %v220_v42  ;;  %v963_v47 = vpack.c.bf16 %v223_v46, %v222_v45  ;;  %v224_v48 = vld [vmem:[#allocation5 + $0xf0] sm:$0xff]  ;;  %v225_v49 = vld [vmem:[#allocation5 + $0xf8] sm:$0xff]  ;;  %v226_v60 = vld [vmem:[#allocation5 + $0x100] sm:$0xff] }
  0x32   :  { %931 = vmatpush3.bf16.msra.mxu1 %v930_v14  ;;  %v966_v50 = vpack.c.bf16 %v225_v49, %v224_v48  ;;  %v1212_v54 = vld [vmem:[#allocation5 + $0x290] sm:$0xff]  ;;  %v227_v61 = vld [vmem:[#allocation5 + $0x108] sm:$0xff]  ;;  %v325_v8 = vld [vmem:[#allocation5 + $0x118] sm:$0xff] }
  0x33   :  { %932 = vmatprep.subr.bf16.mxu1 %v1135_v0  ;;  %v45_v55 = vrot.slane %v1212_v54, %v44_v53  ;;  %v969_v62 = vpack.c.bf16 %v227_v61, %v226_v60  ;;  %v140_v2 = vrot.slane %v1212_v54, %v139_v63  ;;  %v324_v7 = vld [vmem:[#allocation5 + $0x110] sm:$0xff]  ;;  %v326_v10 = vld [vmem:[#allocation5 + $0x120] sm:$0xff]  ;;  %v327_v11 = vld [vmem:[#allocation5 + $0x128] sm:$0xff]  ;;  %v230_v53 = vsub.s32 2, %v1209_v52 }
  0x34   :  { %952 = vmatpush3.bf16.msra.mxu0 %v951_v35  ;;  %v972_v9 = vpack.c.bf16 %v325_v8, %v324_v7  ;;  %v975_v12 = vpack.c.bf16 %v327_v11, %v326_v10  ;;  %v328_v13 = vld [vmem:[#allocation5 + $0x130] sm:$0xff]  ;;  %v329_v14 = vld [vmem:[#allocation5 + $0x138] sm:$0xff]  ;;  %v330_v16 = vld [vmem:[#allocation5 + $0x140] sm:$0xff] }
  0x35   :  { %953 = vmatprep.subr.bf16.mxu0 %v1135_v0  ;;  %v978_v15 = vpack.c.bf16 %v329_v14, %v328_v13  ;;  %v332_v19 = vld [vmem:[#allocation5 + $0x150] sm:$0xff]  ;;  %v334_v22 = vld [vmem:[#allocation5 + $0x160] sm:$0xff]  ;;  %v416_v32 = vld [vmem:[#allocation5 + $0x198] sm:$0xff] }
  0x36   :  { %934 = vmatpush3.bf16.msra.mxu1 %v933_v17  ;;  %v331_v17 = vld [vmem:[#allocation5 + $0x148] sm:$0xff]  ;;  %v336_v25 = vld [vmem:[#allocation5 + $0x170] sm:$0xff]  ;;  %v338_v28 = vld [vmem:[#allocation5 + $0x180] sm:$0xff] }
  0x37   :  { %935 = vmatprep.subr.bf16.mxu1 %v1135_v0  ;;  %v981_v18 = vpack.c.bf16 %v331_v17, %v330_v16  ;;  %v415_v31 = vld [vmem:[#allocation5 + $0x190] sm:$0xff]  ;;  %v417_v33 = vld [vmem:[#allocation5 + $0x1a0] sm:$0xff]  ;;  %v418_v35 = vld [vmem:[#allocation5 + $0x1a8] sm:$0xff] }
  0x38   :  { %955 = vmatpush3.bf16.msra.mxu0 %v954_v38  ;;  %v996_v34 = vpack.c.bf16 %v416_v32, %v415_v31  ;;  %v999_v36 = vpack.c.bf16 %v418_v35, %v417_v33  ;;  %v419_v37 = vld [vmem:[#allocation5 + $0x1b0] sm:$0xff]  ;;  %v420_v38 = vld [vmem:[#allocation5 + $0x1b8] sm:$0xff]  ;;  %v421_v40 = vld [vmem:[#allocation5 + $0x1c0] sm:$0xff] }
  0x39   :  { %956 = vmatprep.subr.bf16.mxu0 %v1135_v0  ;;  %v1002_v39 = vpack.c.bf16 %v420_v38, %v419_v37  ;;  %v423_v43 = vld [vmem:[#allocation5 + $0x1d0] sm:$0xff]  ;;  %v425_v46 = vld [vmem:[#allocation5 + $0x1e0] sm:$0xff]  ;;  %v530_v31 = vld [vmem:[#allocation5 + $0x228] sm:$0xff] }
  0x3a   :  { %937 = vmatpush3.bf16.msra.mxu1 %v936_v20  ;;  %v333_v20 = vld [vmem:[#allocation5 + $0x158] sm:$0xff]  ;;  %v427_v49 = vld [vmem:[#allocation5 + $0x1f0] sm:$0xff]  ;;  %v534_v37 = vld [vmem:[#allocation5 + $0x248] sm:$0xff] }
  0x3b   :  { %938 = vmatprep.subr.bf16.mxu1 %v1135_v0  ;;  %v984_v21 = vpack.c.bf16 %v333_v20, %v332_v19  ;;  %v429_v19 = vld [vmem:[#allocation5 + $0x200] sm:$0xff]  ;;  %v430_v20 = vld [vmem:[#allocation5 + $0x208] sm:$0xff]  ;;  %v531_v33 = vld [vmem:[#allocation5 + $0x230] sm:$0xff] }
  0x3c   :  { %958 = vmatpush3.bf16.msra.mxu0 %v957_v41  ;;  %v422_v41 = vld [vmem:[#allocation5 + $0x1c8] sm:$0xff] }
  0x3d   :  { %959 = vmatprep.subr.bf16.mxu0 %v1135_v0  ;;  %v1005_v42 = vpack.c.bf16 %v422_v41, %v421_v40  ;;  %v536_v40 = vld [vmem:[#allocation5 + $0x258] sm:$0xff] }
  0x3e   :  { %940 = vmatpush3.bf16.msra.mxu1 %v939_v23  ;;  %v335_v23 = vld [vmem:[#allocation5 + $0x168] sm:$0xff] }
  0x3f   :  { %941 = vmatprep.subr.bf16.mxu1 %v1135_v0  ;;  %v987_v24 = vpack.c.bf16 %v335_v23, %v334_v22  ;;  %v342_v22 = vsub.s32 3, %v1209_v52 }
  0x40   :  { %961 = vmatpush3.bf16.msra.mxu0 %v960_v44  ;;  %v424_v44 = vld [vmem:[#allocation5 + $0x1d8] sm:$0xff] }
  0x41   :  { %962 = vmatprep.subr.bf16.mxu0 %v1135_v0  ;;  %v1008_v45 = vpack.c.bf16 %v424_v44, %v423_v43  ;;  %v343_v23 = vrot.slane %v1212_v54, %v342_v22  ;;  %v538_v43 = vld [vmem:[#allocation5 + $0x268] sm:$0xff] }
  0x42   :  { %943 = vmatpush3.bf16.msra.mxu1 %v942_v26  ;;  %v337_v26 = vld [vmem:[#allocation5 + $0x178] sm:$0xff] }
  0x43   :  { %944 = vmatprep.subr.bf16.mxu1 %v1135_v0  ;;  %v990_v27 = vpack.c.bf16 %v337_v26, %v336_v25 }
  0x44   :  { %964 = vmatpush3.bf16.msra.mxu0 %v963_v47  ;;  %v426_v47 = vld [vmem:[#allocation5 + $0x1e8] sm:$0xff] }
  0x45   :  { %965 = vmatprep.subr.bf16.mxu0 %v1135_v0  ;;  %v1011_v48 = vpack.c.bf16 %v426_v47, %v425_v46  ;;  %v540_v46 = vld [vmem:[#allocation5 + $0x278] sm:$0xff] }
  0x46   :  { %946 = vmatpush3.bf16.msra.mxu1 %v945_v29  ;;  %v339_v29 = vld [vmem:[#allocation5 + $0x188] sm:$0xff] }
  0x47   :  { %971 = vmatprep.subr.bf16.mxu1 %v1135_v0  ;;  %v993_v30 = vpack.c.bf16 %v339_v29, %v338_v28  ;;  %v527_v28 = vld [vmem:[#allocation5 + $0x210] sm:$0xff]  ;;  %v528_v29 = vld [vmem:[#allocation5 + $0x218] sm:$0xff] }
  0x48   :  { %967 = vmatpush3.bf16.msra.mxu0 %v966_v50  ;;  %v428_v50 = vld [vmem:[#allocation5 + $0x1f8] sm:$0xff] }
  0x49   :  { %968 = vmatprep.subr.bf16.mxu0 %v1135_v0  ;;  %v1014_v51 = vpack.c.bf16 %v428_v50, %v427_v49  ;;  %v542_v49 = vld [vmem:[#allocation5 + $0x288] sm:$0xff] }
  0x4c   :  { %970 = vmatpush3.bf16.msra.mxu0 %v969_v62 }
  0x4d   :  { %995 = vmatprep.subr.bf16.mxu0 %v1135_v0 }
 0x100   :  { %v116_v56 = vpop.f32.mrb[0].mxu0 }
 0x101   :  { %v117_v57 = vadd.f32 %v116_v56, %v45_v55  ;;  %v744_v58 = vpop.f32.mrb[1].mxu0  ;;  %v231_v55 = vrot.slane %v1212_v54, %v230_v53 }
 0x103   :  { %v120_v59 = vmax.f32 %v117_v57, 0.0 }
 0x105   :  { %778 = vmatmul.mubr.f32.vlgmr.msra.gmra.mrb[0].mxu1 %v120_v59 }
 0x106   :  { %847 = vmatprep.mubr.msk.f32.mxu1 %vm1136_vm0, %v1137_v1  ;;  %973 = vmatpush3.bf16.msra.mxu1 %v972_v9 }
 0x107   :  { %974 = vmatprep.subr.bf16.mxu1 %v1135_v0 }
 0x10a   :  { %976 = vmatpush3.bf16.msra.mxu1 %v975_v12 }
 0x10b   :  { %977 = vmatprep.subr.bf16.mxu1 %v1135_v0 }
 0x10e   :  { %979 = vmatpush3.bf16.msra.mxu1 %v978_v15 }
 0x10f   :  { %980 = vmatprep.subr.bf16.mxu1 %v1135_v0 }
 0x112   :  { %982 = vmatpush3.bf16.msra.mxu1 %v981_v18 }
 0x113   :  { %983 = vmatprep.subr.bf16.mxu1 %v1135_v0 }
 0x116   :  { %985 = vmatpush3.bf16.msra.mxu1 %v984_v21  ;;  %v1017_v21 = vpack.c.bf16 %v430_v20, %v429_v19 }
 0x117   :  { %986 = vmatprep.subr.bf16.mxu1 %v1135_v0 }
 0x11a   :  { %988 = vmatpush3.bf16.msra.mxu1 %v987_v24 }
 0x11b   :  { %989 = vmatprep.subr.bf16.mxu1 %v1135_v0 }
 0x11e   :  { %991 = vmatpush3.bf16.msra.mxu1 %v990_v27 }
 0x11f   :  { %992 = vmatprep.subr.bf16.mxu1 %v1135_v0 }
 0x122   :  { %994 = vmatpush3.bf16.msra.mxu1 %v993_v30  ;;  %v1020_v30 = vpack.c.bf16 %v528_v29, %v527_v28 }
 0x123   :  { %1019 = vmatprep.subr.bf16.mxu1 %v1135_v0 }
 0x1d8   :  { %v207_v3 = vpop.f32.mrb[0].mxu1 }
 0x1d9   :  { %v208_v4 = vadd.f32 %v207_v3, %v140_v2  ;;  %v779_v5 = vpop.f32.mrb[1].mxu1 }
 0x1db   :  { %v211_v6 = vmax.f32 %v208_v4, 0.0 }
 0x1dd   :  { %813 = vmatmul.mubr.f32.vlgmr.msra.gmra.mrb[2].mxu0 %v211_v6 }
 0x1de   :  { %882 = vmatprep.mubr.msk.f32.mxu0 %vm1136_vm0, %v1137_v1  ;;  %997 = vmatpush3.bf16.msra.mxu0 %v996_v34  ;;  %v532_v34 = vld [vmem:[#allocation5 + $0x238] sm:$0xff] }
 0x1df   :  { %998 = vmatprep.subr.bf16.mxu0 %v1135_v0  ;;  %v1026_v35 = vpack.c.bf16 %v532_v34, %v531_v33 }
 0x1e2   :  { %1000 = vmatpush3.bf16.msra.mxu0 %v999_v36  ;;  %v533_v36 = vld [vmem:[#allocation5 + $0x240] sm:$0xff] }
 0x1e3   :  { %1001 = vmatprep.subr.bf16.mxu0 %v1135_v0  ;;  %v1029_v38 = vpack.c.bf16 %v534_v37, %v533_v36 }
 0x1e6   :  { %1003 = vmatpush3.bf16.msra.mxu0 %v1002_v39  ;;  %v535_v39 = vld [vmem:[#allocation5 + $0x250] sm:$0xff] }
 0x1e7   :  { %1004 = vmatprep.subr.bf16.mxu0 %v1135_v0  ;;  %v1032_v41 = vpack.c.bf16 %v536_v40, %v535_v39 }
 0x1ea   :  { %1006 = vmatpush3.bf16.msra.mxu0 %v1005_v42  ;;  %v537_v42 = vld [vmem:[#allocation5 + $0x260] sm:$0xff] }
 0x1eb   :  { %1007 = vmatprep.subr.bf16.mxu0 %v1135_v0  ;;  %v1035_v44 = vpack.c.bf16 %v538_v43, %v537_v42 }
 0x1ee   :  { %1009 = vmatpush3.bf16.msra.mxu0 %v1008_v45  ;;  %v539_v45 = vld [vmem:[#allocation5 + $0x270] sm:$0xff] }
 0x1ef   :  { %1010 = vmatprep.subr.bf16.mxu0 %v1135_v0  ;;  %v1038_v47 = vpack.c.bf16 %v540_v46, %v539_v45 }
 0x1f2   :  { %1012 = vmatpush3.bf16.msra.mxu0 %v1011_v48  ;;  %v541_v48 = vld [vmem:[#allocation5 + $0x280] sm:$0xff] }
 0x1f3   :  { %1013 = vmatprep.subr.bf16.mxu0 %v1135_v0  ;;  %v1041_v50 = vpack.c.bf16 %v542_v49, %v541_v48 }
 0x1f6   :  { %1015 = vmatpush3.bf16.msra.mxu0 %v1014_v51  ;;  %v433_v51 = vsub.s32 4, %v1209_v52 }
 0x1f7   :  { %1016 = vmatprep.subr.bf16.mxu0 %v1135_v0 }
 0x1f8   :  { %v434_v53 = vrot.slane %v1212_v54, %v433_v51 }
 0x1fa   :  { %1018 = vmatpush3.bf16.msra.mxu0 %v1017_v21 }
 0x2b0   :  { %v298_v56 = vpop.f32.mrb[2].mxu0 }
 0x2b1   :  { %v299_v57 = vadd.f32 %v298_v56, %v231_v55  ;;  %v814_v58 = vpop.f32.mrb[3].mxu0 }
 0x2b3   :  { %v302_v59 = vmax.f32 %v299_v57, 0.0 }
 0x2b5   :  { %v303_v60 = vrot.slane %v302_v59, 4  ;;  %v309_v61 = vmul.f32 %v302_v59, %v302_v59 }
 0x2b7   :  { %v304_v62 = vadd.f32 %v303_v60, %v302_v59  ;;  %v310_v63 = vrot.slane %v309_v61, 4 }
 0x2b9   :  { %v305_v2 = vrot.slane %v304_v62, 2  ;;  %v311_v3 = vadd.f32 %v310_v63, %v309_v61 }
 0x2bb   :  { %v306_v4 = vadd.f32 %v305_v2, %v304_v62  ;;  %v312_v5 = vrot.slane %v311_v3, 2 }
 0x2bd   :  { %v307_v6 = vrot.slane %v306_v4, 1  ;;  %v313_v7 = vadd.f32 %v312_v5, %v311_v3 }
 0x2bf   :  { %v308_v8 = vadd.f32 %v307_v6, %v306_v4  ;;  %v314_v9 = vrot.slane %v313_v7, 1 }
 0x2c1   :  { %v315_v10 = vadd.f32 %v314_v9, %v313_v7  ;;  %v316_v11 = vmul.f32 0.125, %v308_v8 }
 0x2c3   :  { %v317_v12 = vmul.f32 0.125, %v315_v10  ;;  %v318_v13 = vmul.f32 %v316_v11, %v316_v11  ;;  %v320_v16 = vsub.f32 %v302_v59, %v316_v11 }
 0x2c5   :  { %v319_v14 = vsub.f32 %v317_v12, %v318_v13 }
 0x2c7   :  { %v321_v15 = vadd.f32 1e-05, %v319_v14 }
 0x2c9   :  { %1051 = vrsqrt.f32 %v321_v15 }
 0x2d3   :  { %v1052_v17 = vpop.eup %1051 }
 0x2d4   :  { %v323_v18 = vmul.f32 %v1052_v17, %v320_v16  ;;  %v545_v17 = vsub.s32 5, %v1209_v52 }
 0x2d6   :  { %848 = vmatmul.mubr.f32.vlgmr.msra.gmra.mrb[2].mxu1 %v323_v18  ;;  %v546_v18 = vrot.slane %v1212_v54, %v545_v17 }
 0x2d7   :  { %917 = vmatprep.mubr.msk.f32.mxu1 %vm1136_vm0, %v1137_v1  ;;  %1021 = vmatpush3.bf16.msra.mxu1 %v1020_v30  ;;  %v529_v1 = vld [vmem:[#allocation5 + $0x220] sm:$0xff] }
 0x2d8   :  { %1022 = vmatprep.subr.bf16.mxu1 %v1135_v0  ;;  %v1023_v32 = vpack.c.bf16 %v530_v31, %v529_v1 }
 0x2db   :  { %1024 = vmatpush3.bf16.msra.mxu1 %v1023_v32 }
 0x2dc   :  { %1025 = vmatprep.subr.bf16.mxu1 %v1135_v0 }
 0x2df   :  { %1027 = vmatpush3.bf16.msra.mxu1 %v1026_v35 }
 0x2e0   :  { %1028 = vmatprep.subr.bf16.mxu1 %v1135_v0 }
 0x2e3   :  { %1030 = vmatpush3.bf16.msra.mxu1 %v1029_v38 }
 0x2e4   :  { %1031 = vmatprep.subr.bf16.mxu1 %v1135_v0 }
 0x2e7   :  { %1033 = vmatpush3.bf16.msra.mxu1 %v1032_v41 }
 0x2e8   :  { %1034 = vmatprep.subr.bf16.mxu1 %v1135_v0 }
 0x2eb   :  { %1036 = vmatpush3.bf16.msra.mxu1 %v1035_v44 }
 0x2ec   :  { %1037 = vmatprep.subr.bf16.mxu1 %v1135_v0 }
 0x2ef   :  { %1039 = vmatpush3.bf16.msra.mxu1 %v1038_v47 }
 0x2f0   :  { %1040 = vmatprep.subr.bf16.mxu1 %v1135_v0 }
 0x2f3   :  { %1042 = vmatpush3.bf16.msra.mxu1 %v1041_v50 }
 0x3a9   :  { %v410_v24 = vpop.f32.mrb[2].mxu1 }
 0x3aa   :  { %v411_v25 = vadd.f32 %v410_v24, %v343_v23  ;;  %v849_v26 = vpop.f32.mrb[3].mxu1 }
 0x3ac   :  { %v414_v27 = vmax.f32 %v411_v25, 0.0 }
 0x3ae   :  { %883 = vmatmul.mubr.f32.vlgmr.msra.gmra.mrb[4].mxu0 %v414_v27 }
 0x481   :  { %v501_v55 = vpop.f32.mrb[4].mxu0 }
 0x482   :  { %v502_v56 = vadd.f32 %v501_v55, %v434_v53  ;;  %v884_v57 = vpop.f32.mrb[5].mxu0 }
 0x484   :  { %v505_v58 = vmax.f32 %v502_v56, 0.0 }
 0x486   :  { %v506_v59 = vrot.slane %v505_v58, 4  ;;  %v512_v60 = vmul.f32 %v505_v58, %v505_v58 }
 0x488   :  { %v507_v61 = vadd.f32 %v506_v59, %v505_v58  ;;  %v513_v62 = vrot.slane %v512_v60, 4 }
 0x48a   :  { %v508_v63 = vrot.slane %v507_v61, 2  ;;  %v514_v2 = vadd.f32 %v513_v62, %v512_v60 }
 0x48c   :  { %v509_v3 = vadd.f32 %v508_v63, %v507_v61  ;;  %v515_v4 = vrot.slane %v514_v2, 2 }
 0x48e   :  { %v510_v5 = vrot.slane %v509_v3, 1  ;;  %v516_v6 = vadd.f32 %v515_v4, %v514_v2 }
 0x490   :  { %v511_v0 = vadd.f32 %v510_v5, %v509_v3  ;;  %v517_v7 = vrot.slane %v516_v6, 1 }
 0x492   :  { %v518_v8 = vadd.f32 %v517_v7, %v516_v6  ;;  %v519_v9 = vmul.f32 0.125, %v511_v0 }
 0x494   :  { %v520_v10 = vmul.f32 0.125, %v518_v8  ;;  %v521_v11 = vmul.f32 %v519_v9, %v519_v9  ;;  %v523_v14 = vsub.f32 %v505_v58, %v519_v9 }
 0x496   :  { %v522_v12 = vsub.f32 %v520_v10, %v521_v11 }
 0x498   :  { %v524_v13 = vadd.f32 1e-05, %v522_v12 }
 0x49a   :  { %1053 = vrsqrt.f32 %v524_v13 }
 0x4a4   :  { %v1054_v15 = vpop.eup %1053 }
 0x4a5   :  { %v526_v16 = vmul.f32 %v1054_v15, %v523_v14 }
 0x4a7   :  { %918 = vmatmul.mubr.f32.vlgmr.msra.gmra.mrb[4].mxu1 %v526_v16 }
 0x57a   :  { %v613_v19 = vpop.f32.mrb[4].mxu1 }
 0x57b   :  { %v614_v20 = vadd.f32 %v613_v19, %v546_v18  ;;  %v919_v21 = vpop.f32.mrb[5].mxu1 }
 0x57d   :  { %v617_v22 = vmul.f32 2.0, %v614_v20 }
 0x57f   :  { %v619_v23 = vmul.f32 1.442695, %v617_v22  ;;  %vm618_vm3 = vcmp.gt.f32.partialorder %v617_v22, 20.0 }
 0x581   :  { %1055 = vpow2.f32 %v619_v23 }
 0x58b   :  { %v1056_v24 = vpop.eup %1055 }
 0x58c   :  { %v621_v25 = vadd.f32 1.0, %v1056_v24  ;;  %v624_v26 = vmul.f32 -0.5, %v1056_v24  ;;  %v627_v28 = vand.u32 2147483647, %v1056_v24 }
 0x58e   :  { %1057 = vlog2.f32 %v621_v25  ;;  %v625_v27 = vadd.f32 1.0, %v624_v26  ;;  %vm628_vm2 = vcmp.lt.f32.partialorder %v627_v28, 0.0004427343 }
 0x590   :  { %v626_v1 = vmul.f32 %v1056_v24, %v625_v27 }
 0x598   :  { %v1058_v29 = vpop.eup %1057 }
 0x599   :  { %v623_v30 = vmul.f32 0.6931472, %v1058_v29 }
 0x59b   :  { %v629_v52 = vsel %vm628_vm2, %v626_v1, %v623_v30 }
 0x59c   :  { %v630_v54 = vmul.f32 0.5, %v629_v52 }
 0x59e   :  { %v631_v31 = vsel %vm618_vm3, %v614_v20, %v630_v54 }
 0x59f   :  { %632 = vst [vmem:[#allocation7] sm:$0xff] %v631_v31 }
 0x5a0   :  { %1114 = shalt.err (!%p1111_p6)
}
 0x5a1   :  { %s1115_s10 = scalar_lea.hbm %s1268_s2, 128 }
 0x5a2   :  { %p1116_p7 = scmp.ne.s32.totalorder %s1268_s2, %s1115_s10  ;;  %p1119_p8 = scmp.lt.u32.totalorder %s1115_s10, %s1268_s2 }
 0x5a4   :  { %p1121_p9 = pnand %p1119_p8, %p1116_p7 }
 0x5a6   :  { %1124 = shalt.err (!%p1121_p9)
}
 0x5a7   :  { %642 = dma.vmem_to_hbm [thread:$0]  %s640_s6, 128, %s1268_s2, [#allocation4]  }
 0x5a8   :  { %1129 = dma.done.wait [#allocation4], 128  }
 0x5a9   :  { %1130 = vsyncadd [#allocation4], 4294967168 }
 0x5aa   :  { %646 = vsyncpa [#allocation3], 1 }
 0x5ab   :  { %647 = vsyncpa [#allocation6], 1 }
 0x5ac   :  { %648 = vsyncpa [#allocation4], 1 }

</bundles_post_ra>
